<compile_context>
chip_gen: v5e
topology: v5e:2x2
jax: 0.10.0
libtpu: 0.0.40
codegen_flags: <defaults>
</compile_context>

<pallas_src>
import functools

import jax
import jax.numpy as jnp
from jax.experimental import pallas as pl
from jax.experimental.pallas import tpu as pltpu

BN_EPS = 1e-5
OUT_PAD = 128       # lane-dense padded head width (multiple of 128)
_ROW_ALIGN = 16     # batch rows aligned to bf16 sublane packing


def _round_up(n, m):
    return ((n + m - 1) // m) * m


def _hw_config():
    """Return (vmem_capacity_bytes, has_bf16_vpu) with conservative fallbacks."""
    kind = ""
    try:
        kind = jax.devices()[0].device_kind.lower()
    except Exception:
        pass
    vmem = None
    try:
        vmem = int(pltpu.get_tpu_info().vmem_capacity_bytes)
    except Exception:
        vmem = None
    if vmem is None:
        # v5e/v5p/v6e have 128 MiB VMEM; default conservatively to 64 MiB (v7x).
        vmem = (128 << 20) if ("v5" in kind or "v6" in kind) else (64 << 20)
    old_vpu = any(t in kind for t in ("v2", "v3", "v4", "v5"))   # no bf16 VALU
    return vmem, (not old_vpu)


def _mlp_kernel(x_ref,
                w1_ref, b1_ref,
                w2_ref, b2_ref,
                w3_ref, b3_ref,
                wh_ref, bh_ref,
                out_ref, *, act_dtype):
    """One batch tile: 4 bf16 matmuls (f32 accumulate) + bias/ReLU epilogues."""
    # in-kernel f32 -> bf16 cast (cheap VPU op hidden under the input DMA)
    x = x_ref[...].astype(jnp.bfloat16)

    h = jnp.dot(x, w1_ref[...], preferred_element_type=jnp.float32)
    h = jnp.maximum(h.astype(act_dtype) + b1_ref[...], 0.0).astype(jnp.bfloat16)

    h = jnp.dot(h, w2_ref[...], preferred_element_type=jnp.float32)
    h = jnp.maximum(h.astype(act_dtype) + b2_ref[...], 0.0).astype(jnp.bfloat16)

    h = jnp.dot(h, w3_ref[...], preferred_element_type=jnp.float32)
    h = jnp.maximum(h.astype(act_dtype) + b3_ref[...], 0.0).astype(jnp.bfloat16)

    out = jnp.dot(h, wh_ref[...], preferred_element_type=jnp.float32)
    out_ref[...] = (out.astype(act_dtype) + bh_ref[...]).astype(out_ref.dtype)


def _fold_bn(w, b, g, be, m, v):
    """Fold eval-mode BatchNorm1d into the preceding Linear."""
    s = g * jax.lax.rsqrt(v + BN_EPS)           # (1, out)
    return w * s, (b - m) * s + be              # W' (in, out), b' (1, out)


def prepare_params(params, *, use_bf16_epilogue=None):
    """One-time parameter prep: BN folding, head padding, dtype casts.

    Call once and reuse the result so the per-forward path is just pallas_call
    plus the final slice.
    """
    if use_bf16_epilogue is None:
        _, use_bf16_epilogue = _hw_config()
    act_dtype = jnp.bfloat16 if use_bf16_epilogue else jnp.float32

    w1, b1 = _fold_bn(params["w1"], params["b1"], params["g1"],
                      params["be1"], params["m1"], params["v1"])
    w2, b2 = _fold_bn(params["w2"], params["b2"], params["g2"],
                      params["be2"], params["m2"], params["v2"])
    w3, b3 = _fold_bn(params["w3"], params["b3"], params["g3"],
                      params["be3"], params["m3"], params["v3"])

    hidden, num_tasks = params["wh"].shape
    assert num_tasks <= OUT_PAD
    wh = jnp.zeros((hidden, OUT_PAD), jnp.float32).at[:, :num_tasks].set(params["wh"])
    bh = jnp.zeros((1, OUT_PAD), jnp.float32).at[:, :num_tasks].set(params["bh"])

    return {
        "num_tasks": num_tasks,
        "act_dtype": act_dtype,
        "w1": w1.astype(jnp.bfloat16), "b1": b1.astype(act_dtype),
        "w2": w2.astype(jnp.bfloat16), "b2": b2.astype(act_dtype),
        "w3": w3.astype(jnp.bfloat16), "b3": b3.astype(act_dtype),
        "wh": wh.astype(jnp.bfloat16), "bh": bh.astype(act_dtype),
    }


def forward(x, prepared):
    """x: (B, D) float32.  prepared: output of prepare_params.  -> (B, T) f32."""
    B, D = x.shape
    num_tasks = prepared["num_tasks"]
    act_dtype = prepared["act_dtype"]
    vmem_cap, _ = _hw_config()

    # Pad the batch only to a multiple of 16 rows (at most 15 wasted rows).
    B_pad = _round_up(max(B, _ROW_ALIGN), _ROW_ALIGN)
    if B_pad != B:
        x = jnp.pad(x, ((0, B_pad - B), (0, 0)))

    # ---- per-generation batch-tile sizing ----
    big_vmem = vmem_cap >= (96 << 20)            # v5e / v5p / v6e: 128 MiB VMEM
    tile_budget = (40 << 20) if big_vmem else (16 << 20)
    tb_cap = 4096 if big_vmem else 2048

    # VMEM bytes per batch row: double-buffered f32 x tile + double-buffered
    # bf16 out tile + live f32/bf16 activations of widths 256/128/64/128.
    per_row = 2 * 4 * D + 2 * 2 * OUT_PAD + 6 * (256 + 128 + 64 + OUT_PAD)
    tb = max(_ROW_ALIGN,
             (min(tb_cap, tile_budget // per_row) // _ROW_ALIGN) * _ROW_ALIGN)
    tb = min(tb, B_pad)
    # Keep >= 2 grid steps when there is enough work so megacore chips can
    # shard the "parallel" batch axis across both TensorCores.
    if B_pad >= 2 * _ROW_ALIGN:
        tb = min(tb, _round_up((B_pad + 1) // 2, _ROW_ALIGN))
    n_tiles = -(-B_pad // tb)                    # partial last tile allowed

    # ---- VMEM limit: resident weights + tile buffers + margin ----
    w_bytes = 2 * (D * 256 + 256 * 128 + 128 * 64 + 64 * OUT_PAD)
    b_bytes = jnp.dtype(act_dtype).itemsize * (256 + 128 + 64 + OUT_PAD)
    resident_bytes = w_bytes + b_bytes
    vmem_hard_cap = (96 << 20) if big_vmem else (40 << 20)
    vmem_limit = int(min(vmem_hard_cap,
                         max(32 << 20, resident_bytes + tb * per_row + (8 << 20))))

    flops = 2 * B_pad * (D * 256 + 256 * 128 + 128 * 64 + 64 * OUT_PAD)
    bytes_accessed = B_pad * D * 4 + B_pad * OUT_PAD * 2 + resident_bytes

    kernel = functools.partial(_mlp_kernel, act_dtype=act_dtype)

    def resident(arr):
        # Same block every grid step -> loaded once, stays resident in VMEM.
        return pl.BlockSpec(arr.shape, lambda i: (0, 0))

    out = pl.pallas_call(
        kernel,
        out_shape=jax.ShapeDtypeStruct((B_pad, OUT_PAD), jnp.bfloat16),
        grid=(n_tiles,),
        in_specs=[
            pl.BlockSpec((tb, D), lambda i: (i, 0)),   # streamed batch tile (f32)
            resident(prepared["w1"]), resident(prepared["b1"]),
            resident(prepared["w2"]), resident(prepared["b2"]),
            resident(prepared["w3"]), resident(prepared["b3"]),
            resident(prepared["wh"]), resident(prepared["bh"]),
        ],
        out_specs=pl.BlockSpec((tb, OUT_PAD), lambda i: (i, 0)),
        compiler_params=pltpu.CompilerParams(
            dimension_semantics=("parallel",),
            vmem_limit_bytes=vmem_limit,
        ),
        cost_estimate=pl.CostEstimate(
            flops=flops, transcendentals=0, bytes_accessed=bytes_accessed),
    )(x,
      prepared["w1"], prepared["b1"],
      prepared["w2"], prepared["b2"],
      prepared["w3"], prepared["b3"],
      prepared["wh"], prepared["bh"])

    return out[:B, :num_tasks].astype(jnp.float32)


def multi_label_audio_regressor(x, params):
    """Convenience one-shot entry point (prep + forward)."""
    return forward(x, prepare_params(params))


def init_params(key, input_dim, num_tasks=6):
    """Deterministic init mimicking PyTorch defaults (uniform +/- 1/sqrt(fan_in))."""
    dims = [(input_dim, 256), (256, 128), (128, 64)]
    params = {}
    keys = jax.random.split(key, 8)

    for li, (fan_in, fan_out) in enumerate(dims, start=1):
        bound = 1.0 / (fan_in ** 0.5)
        kw, kb = jax.random.split(keys[li - 1])
        params[f"w{li}"] = jax.random.uniform(
            kw, (fan_in, fan_out), jnp.float32, -bound, bound)
        params[f"b{li}"] = jax.random.uniform(
            kb, (1, fan_out), jnp.float32, -bound, bound)
        # BatchNorm1d defaults: gamma=1, beta=0, running_mean=0, running_var=1
        params[f"g{li}"] = jnp.ones((1, fan_out), jnp.float32)
        params[f"be{li}"] = jnp.zeros((1, fan_out), jnp.float32)
        params[f"m{li}"] = jnp.zeros((1, fan_out), jnp.float32)
        params[f"v{li}"] = jnp.ones((1, fan_out), jnp.float32)

    # Heads: num_tasks independent Linear(64, 1) packed into one (64, T) matrix.
    bound = 1.0 / (64 ** 0.5)
    kw, kb = jax.random.split(keys[3])
    params["wh"] = jax.random.uniform(kw, (64, num_tasks), jnp.float32, -bound, bound)
    params["bh"] = jax.random.uniform(kb, (1, num_tasks), jnp.float32, -bound, bound)
    return params


def reference_forward(x, params):
    """Plain-JAX f32 reference of the eval-mode PyTorch forward."""
    h = x
    for li in (1, 2, 3):
        h = h @ params[f"w{li}"] + params[f"b{li}"]
        h = (params[f"g{li}"] * (h - params[f"m{li}"])
             * jax.lax.rsqrt(params[f"v{li}"] + BN_EPS) + params[f"be{li}"])
        h = jnp.maximum(h, 0.0)
    return h @ params["wh"] + params["bh"]


if __name__ == "__main__":
    key = jax.random.PRNGKey(0)
    k_param, k_x = jax.random.split(key)

    B, D, NUM_TASKS = 8, 32, 6
    params = init_params(k_param, D, NUM_TASKS)
    x = jax.random.normal(k_x, (B, D), jnp.float32)

    prepared = prepare_params(params)          # one-time param prep
    out = jax.block_until_ready(forward(x, prepared))
    ref = reference_forward(x, params)

    assert out.shape == (B, NUM_TASKS), out.shape
    assert out.dtype == jnp.float32
    max_err = float(jnp.max(jnp.abs(out - ref)))
    # bf16 matmuls / bf16 output storage (f32 accumulation) -> relaxed tolerance.
    assert jnp.allclose(out, ref, atol=3e-2, rtol=3e-2), f"max abs diff {max_err}"

    print("KERNEL_OK")
</pallas_src>

<mosaic_0001>
module attributes {stable_mosaic.version = 11 : i64} {
  func.func @_mlp_kernel(%arg0: i32, %arg1: memref<16x32xf32, #tpu.memory_space<vmem>>, %arg2: memref<32x256xbf16, #tpu.memory_space<vmem>>, %arg3: memref<1x256xbf16, #tpu.memory_space<vmem>>, %arg4: memref<256x128xbf16, #tpu.memory_space<vmem>>, %arg5: memref<1x128xbf16, #tpu.memory_space<vmem>>, %arg6: memref<128x64xbf16, #tpu.memory_space<vmem>>, %arg7: memref<1x64xbf16, #tpu.memory_space<vmem>>, %arg8: memref<64x128xbf16, #tpu.memory_space<vmem>>, %arg9: memref<1x128xbf16, #tpu.memory_space<vmem>>, %arg10: memref<16x128xbf16, #tpu.memory_space<vmem>>) attributes {dimension_semantics = [#tpu.dimension_semantics<parallel>], iteration_bounds = array<i64: 1>, scalar_prefetch = 0 : i64, scratch_operands = 0 : i64, tpu.core_type = #tpu.core_type<tc>, window_params = [{transform_indices = @transform_0, window_bounds = array<i64: 16, 32>}, {pipeline_mode = #tpu.pipeline_mode<synchronous>, transform_indices = @transform_1, window_bounds = array<i64: 32, 256>}, {pipeline_mode = #tpu.pipeline_mode<synchronous>, transform_indices = @transform_2, window_bounds = array<i64: 1, 256>}, {pipeline_mode = #tpu.pipeline_mode<synchronous>, transform_indices = @transform_3, window_bounds = array<i64: 256, 128>}, {pipeline_mode = #tpu.pipeline_mode<synchronous>, transform_indices = @transform_4, window_bounds = array<i64: 1, 128>}, {pipeline_mode = #tpu.pipeline_mode<synchronous>, transform_indices = @transform_5, window_bounds = array<i64: 128, 64>}, {pipeline_mode = #tpu.pipeline_mode<synchronous>, transform_indices = @transform_6, window_bounds = array<i64: 1, 64>}, {pipeline_mode = #tpu.pipeline_mode<synchronous>, transform_indices = @transform_7, window_bounds = array<i64: 64, 128>}, {pipeline_mode = #tpu.pipeline_mode<synchronous>, transform_indices = @transform_8, window_bounds = array<i64: 1, 128>}, {transform_indices = @transform_9, window_bounds = array<i64: 16, 128>}]} {
    %c0 = arith.constant 0 : index
    %c0_0 = arith.constant 0 : index
    %0 = vector.load %arg1[%c0, %c0_0] : memref<16x32xf32, #tpu.memory_space<vmem>>, vector<16x32xf32>
    %1 = arith.truncf %0 : vector<16x32xf32> to vector<16x32xbf16>
    %c0_1 = arith.constant 0 : index
    %c0_2 = arith.constant 0 : index
    %2 = vector.load %arg2[%c0_1, %c0_2] : memref<32x256xbf16, #tpu.memory_space<vmem>>, vector<32x256xbf16>
    %cst = arith.constant dense<0.000000e+00> : vector<16x256xf32>
    %3 = tpu.matmul %1, %2, %cst {dimension_numbers = #tpu.dot_dimension_numbers<[1], [0], [0], [1], [0, 0, 1, 1], [], []>} : vector<16x32xbf16>, vector<32x256xbf16>, vector<16x256xf32> -> vector<16x256xf32>
    %4 = arith.truncf %3 : vector<16x256xf32> to vector<16x256xbf16>
    %c0_3 = arith.constant 0 : index
    %c0_4 = arith.constant 0 : index
    %5 = vector.load %arg3[%c0_3, %c0_4] : memref<1x256xbf16, #tpu.memory_space<vmem>>, vector<1x256xbf16>
    %6 = vector.broadcast %5 : vector<1x256xbf16> to vector<16x256xbf16>
    %7 = arith.addf %4, %6 : vector<16x256xbf16>
    %cst_5 = arith.constant 0.000000e+00 : bf16
    %8 = vector.broadcast %cst_5 : bf16 to vector<16x256xbf16>
    %9 = arith.maximumf %7, %8 : vector<16x256xbf16>
    %c0_6 = arith.constant 0 : index
    %c0_7 = arith.constant 0 : index
    %10 = vector.load %arg4[%c0_6, %c0_7] : memref<256x128xbf16, #tpu.memory_space<vmem>>, vector<256x128xbf16>
    %cst_8 = arith.constant dense<0.000000e+00> : vector<16x128xf32>
    %11 = tpu.matmul %9, %10, %cst_8 {dimension_numbers = #tpu.dot_dimension_numbers<[1], [0], [0], [1], [0, 0, 1, 1], [], []>} : vector<16x256xbf16>, vector<256x128xbf16>, vector<16x128xf32> -> vector<16x128xf32>
    %12 = arith.truncf %11 : vector<16x128xf32> to vector<16x128xbf16>
    %c0_9 = arith.constant 0 : index
    %c0_10 = arith.constant 0 : index
    %13 = vector.load %arg5[%c0_9, %c0_10] : memref<1x128xbf16, #tpu.memory_space<vmem>>, vector<1x128xbf16>
    %14 = vector.broadcast %13 : vector<1x128xbf16> to vector<16x128xbf16>
    %15 = arith.addf %12, %14 : vector<16x128xbf16>
    %cst_11 = arith.constant 0.000000e+00 : bf16
    %16 = vector.broadcast %cst_11 : bf16 to vector<16x128xbf16>
    %17 = arith.maximumf %15, %16 : vector<16x128xbf16>
    %c0_12 = arith.constant 0 : index
    %c0_13 = arith.constant 0 : index
    %18 = vector.load %arg6[%c0_12, %c0_13] : memref<128x64xbf16, #tpu.memory_space<vmem>>, vector<128x64xbf16>
    %cst_14 = arith.constant dense<0.000000e+00> : vector<16x64xf32>
    %19 = tpu.matmul %17, %18, %cst_14 {dimension_numbers = #tpu.dot_dimension_numbers<[1], [0], [0], [1], [0, 0, 1, 1], [], []>} : vector<16x128xbf16>, vector<128x64xbf16>, vector<16x64xf32> -> vector<16x64xf32>
    %20 = arith.truncf %19 : vector<16x64xf32> to vector<16x64xbf16>
    %c0_15 = arith.constant 0 : index
    %c0_16 = arith.constant 0 : index
    %21 = vector.load %arg7[%c0_15, %c0_16] : memref<1x64xbf16, #tpu.memory_space<vmem>>, vector<1x64xbf16>
    %22 = vector.broadcast %21 : vector<1x64xbf16> to vector<16x64xbf16>
    %23 = arith.addf %20, %22 : vector<16x64xbf16>
    %cst_17 = arith.constant 0.000000e+00 : bf16
    %24 = vector.broadcast %cst_17 : bf16 to vector<16x64xbf16>
    %25 = arith.maximumf %23, %24 : vector<16x64xbf16>
    %c0_18 = arith.constant 0 : index
    %c0_19 = arith.constant 0 : index
    %26 = vector.load %arg8[%c0_18, %c0_19] : memref<64x128xbf16, #tpu.memory_space<vmem>>, vector<64x128xbf16>
    %cst_20 = arith.constant dense<0.000000e+00> : vector<16x128xf32>
    %27 = tpu.matmul %25, %26, %cst_20 {dimension_numbers = #tpu.dot_dimension_numbers<[1], [0], [0], [1], [0, 0, 1, 1], [], []>} : vector<16x64xbf16>, vector<64x128xbf16>, vector<16x128xf32> -> vector<16x128xf32>
    %28 = arith.truncf %27 : vector<16x128xf32> to vector<16x128xbf16>
    %c0_21 = arith.constant 0 : index
    %c0_22 = arith.constant 0 : index
    %29 = vector.load %arg9[%c0_21, %c0_22] : memref<1x128xbf16, #tpu.memory_space<vmem>>, vector<1x128xbf16>
    %30 = vector.broadcast %29 : vector<1x128xbf16> to vector<16x128xbf16>
    %31 = arith.addf %28, %30 : vector<16x128xbf16>
    %c0_23 = arith.constant 0 : index
    %c0_24 = arith.constant 0 : index
    %32 = vector.load %arg10[%c0_23, %c0_24] : memref<16x128xbf16, #tpu.memory_space<vmem>>, vector<16x128xbf16>
    tpu.vector_store %arg10[%c0_23, %c0_24], %31 {strides = array<i32>} : memref<16x128xbf16, #tpu.memory_space<vmem>>, vector<16x128xbf16>,
    return
  }
  func.func @transform_0(%arg0: i32) -> (i32, i32) {
    %c0_i32 = arith.constant 0 : i32
    %c0_i32_0 = arith.constant 0 : i32
    return %arg0, %c0_i32 : i32, i32
  }
  func.func @transform_1(%arg0: i32) -> (i32, i32) {
    %c0_i32 = arith.constant 0 : i32
    %c0_i32_0 = arith.constant 0 : i32
    %c0_i32_1 = arith.constant 0 : i32
    return %c0_i32, %c0_i32_0 : i32, i32
  }
  func.func @transform_2(%arg0: i32) -> (i32, i32) {
    %c0_i32 = arith.constant 0 : i32
    %c0_i32_0 = arith.constant 0 : i32
    %c0_i32_1 = arith.constant 0 : i32
    return %c0_i32, %c0_i32_0 : i32, i32
  }
  func.func @transform_3(%arg0: i32) -> (i32, i32) {
    %c0_i32 = arith.constant 0 : i32
    %c0_i32_0 = arith.constant 0 : i32
    %c0_i32_1 = arith.constant 0 : i32
    return %c0_i32, %c0_i32_0 : i32, i32
  }
  func.func @transform_4(%arg0: i32) -> (i32, i32) {
    %c0_i32 = arith.constant 0 : i32
    %c0_i32_0 = arith.constant 0 : i32
    %c0_i32_1 = arith.constant 0 : i32
    return %c0_i32, %c0_i32_0 : i32, i32
  }
  func.func @transform_5(%arg0: i32) -> (i32, i32) {
    %c0_i32 = arith.constant 0 : i32
    %c0_i32_0 = arith.constant 0 : i32
    %c0_i32_1 = arith.constant 0 : i32
    return %c0_i32, %c0_i32_0 : i32, i32
  }
  func.func @transform_6(%arg0: i32) -> (i32, i32) {
    %c0_i32 = arith.constant 0 : i32
    %c0_i32_0 = arith.constant 0 : i32
    %c0_i32_1 = arith.constant 0 : i32
    return %c0_i32, %c0_i32_0 : i32, i32
  }
  func.func @transform_7(%arg0: i32) -> (i32, i32) {
    %c0_i32 = arith.constant 0 : i32
    %c0_i32_0 = arith.constant 0 : i32
    %c0_i32_1 = arith.constant 0 : i32
    return %c0_i32, %c0_i32_0 : i32, i32
  }
  func.func @transform_8(%arg0: i32) -> (i32, i32) {
    %c0_i32 = arith.constant 0 : i32
    %c0_i32_0 = arith.constant 0 : i32
    %c0_i32_1 = arith.constant 0 : i32
    return %c0_i32, %c0_i32_0 : i32, i32
  }
  func.func @transform_9(%arg0: i32) -> (i32, i32) {
    %c0_i32 = arith.constant 0 : i32
    %c0_i32_0 = arith.constant 0 : i32
    return %arg0, %c0_i32 : i32, i32
  }
}

</mosaic_0001>

<bundles_post_ra>
// kernel: tpu_custom_call.1
= control target key start
LH: loop header
LB: loop body
LE: loop exit
PB: predicated region body
PF: predicated region fallthrough
CT: control target
= control target key end

     0   :  { %14 = vsyncpa [#allocation3], 0  ;;  %s869_s0 = inlined_call_operand.vmem [shape: f32[16,32], index: 0, kind: input, shape index: {}]   ;;  %s870_s1 = inlined_call_operand.vmem [shape: bf16[32,256], index: 1, kind: input, shape index: {}]   ;;  %s871_s2 = inlined_call_operand.vmem [shape: bf16[1,256], index: 2, kind: input, shape index: {}]   ;;  %s872_s3 = inlined_call_operand.hbm [shape: bf16[256,128], index: 3, kind: input, shape index: {}]   ;;  %s873_s4 = inlined_call_operand.vmem [shape: bf16[1,128], index: 4, kind: input, shape index: {}]   ;;  %s874_s5 = inlined_call_operand.vmem [shape: bf16[128,64], index: 5, kind: input, shape index: {}]   ;;  %s875_s6 = inlined_call_operand.vmem [shape: bf16[1,64], index: 6, kind: input, shape index: {}]   ;;  %s876_s7 = inlined_call_operand.vmem [shape: bf16[64,128], index: 7, kind: input, shape index: {}]   ;;  %s877_s8 = inlined_call_operand.vmem [shape: bf16[1,128], index: 8, kind: input, shape index: {}]   ;;  %s878_s9 = inlined_call_operand.hbm [shape: bf16[16,128], index: 9, kind: output, shape index: {}]  }
   0x1   :  { %15 = vsyncpa [#allocation4], 0  ;;  %s26_s11 = sshll.u32 %s872_s3, 4  ;;  %s725_s12 = smov [#allocation2]   ;;  %s27_s11 = int_to_ptr.hbm [resolvable:$true] %s26_s11 }
   0x2   :  { %s28_s13 = sshll.u32 %s725_s12, 4  ;;  %s726_s14 = smov 64   ;;  %s29_s13 = int_to_ptr.vmem [resolvable:$true] %s28_s13 }
   0x3   :  { %s727_s15 = smov 4  }
   0x4   :  { %34 = dma.hbm_to_vmem [thread:$0]  %s27_s11, 2048, %s29_s13, [#allocation3], %s726_s14, %s726_s14, %s727_s15  }
   0x5   :  { %721 = dma.done.wait [#allocation3], 2048  }
   0x6   :  { %722 = vsyncadd [#allocation3], 4294965248  ;;  %v511_v0 = vld [vmem:[%s870_s1 + $0x10] sm:$0xf]  ;;  %v635_v1 = vld [vmem:[%s870_s1 + $0x14] sm:$0xf0] }
   0x7   :  { %v634_v2 = vld [vmem:[%s870_s1 + $0x14] sm:$0xf]  ;;  %v512_v3 = vor.u32 %v635_v1, %v511_v0  ;;  %v513_v4 = vld [vmem:[%s870_s1 + $0x18] sm:$0xf0]  ;;  %v503_v5 = vld [vmem:[%s870_s1] sm:$0xf] }
   0x8   :  { %v633_v6 = vld [vmem:[%s870_s1 + $0x4] sm:$0xf0]  ;;  %v516_v7 = vor.u32 %v634_v2, %v513_v4  ;;  %v632_v8 = vld [vmem:[%s870_s1 + $0x4] sm:$0xf]  ;;  %v505_v9 = vld [vmem:[%s870_s1 + $0x8] sm:$0xf0] }
   0x9   :  { %v50_v10 = vld [vmem:[%s869_s0] sm:$0xff]  ;;  %87 = vmatpush.bf16.msra.mxu0 %v512_v3  ;;  %v504_v11 = vor.u32 %v633_v6, %v503_v5  ;;  %v51_v12 = vld [vmem:[%s869_s0 + $0x8] sm:$0xff]  ;;  %v508_v15 = vor.u32 %v632_v8, %v505_v9  ;;  %v642_v16 = vld [vmem:[#allocation2 + $0x30] sm:$0xff]  ;;  %vm77_vm0 = vcmask 261120   ;;  %vm448_vm1 = vcmask 523264   ;;  %s488_s21 = sshll.u32 %s878_s9, 4  ;;  %s489_s21 = int_to_ptr.hbm [resolvable:$true] %s488_s21 }
   0xa   :  { %v643_v13 = vld [vmem:[#allocation2 + $0x38] sm:$0xff]  ;;  %101 = vmatpush.bf16.msra.mxu1 %v516_v7  ;;  %v650_v17 = vld [vmem:[#allocation2 + $0x70] sm:$0xff]  ;;  %v52_v18 = vpack.c.bf16 %v51_v12, %v50_v10  ;;  %v641_v19 = vld [vmem:[#allocation2 + $0x28] sm:$0xff] }
   0xb   :  { %v651_v14 = vld [vmem:[#allocation2 + $0x78] sm:$0xff]  ;;  %272 = vmatpush.bf16.msra.mxu2 %v643_v13  ;;  %v649_v20 = vld [vmem:[#allocation2 + $0x68] sm:$0xff]  ;;  %v640_v22 = vld [vmem:[#allocation2 + $0x20] sm:$0xff] }
   0xc   :  { %286 = vmatpush.bf16.msra.mxu3 %v651_v14  ;;  %v111_v21 = vld [vmem:[%s871_s2] sm:$0x3]  ;;  %v648_v23 = vld [vmem:[#allocation2 + $0x60] sm:$0xff]  ;;  %v638_v26 = vld [vmem:[#allocation2 + $0x10] sm:$0xff] }
   0xd   :  { %88 = vmatpush.bf16.msra.mxu0 %v504_v11  ;;  %113 = vst [vmem:[#allocation1] ss:$9 sm:$0xff] %v111_v21  ;;  %v639_v24 = vld [vmem:[#allocation2 + $0x18] sm:$0xff]  ;;  %v646_v27 = vld [vmem:[#allocation2 + $0x50] sm:$0xff]  ;;  %v637_v28 = vld [vmem:[#allocation2 + $0x8] sm:$0xff] }
   0xe   :  { %102 = vmatpush.bf16.msra.mxu1 %v508_v15  ;;  %v647_v25 = vld [vmem:[#allocation2 + $0x58] sm:$0xff]  ;;  %v645_v29 = vld [vmem:[#allocation2 + $0x48] sm:$0xff]  ;;  %v636_v30 = vld [vmem:[#allocation2] sm:$0xff] }
   0xf   :  { %273 = vmatpush.bf16.msra.mxu2 %v642_v16  ;;  %v644_v31 = vld [vmem:[#allocation2 + $0x40] sm:$0xff]  ;;  %v659_v32 = vld [vmem:[%s874_s5 + $0x38] sm:$0xff]  ;;  %v658_v33 = vld [vmem:[%s874_s5 + $0x30] sm:$0xff] }
  0x10   :  { %287 = vmatpush.bf16.msra.mxu3 %v650_v17  ;;  %517 = vmatmul.msk.bf16.vlgmr.msra.gmra.mxu0 %vm77_vm0, %v52_v18  ;;  %v657_v34 = vld [vmem:[%s874_s5 + $0x28] sm:$0xff]  ;;  %v656_v63 = vld [vmem:[%s874_s5 + $0x20] sm:$0xff]  ;;  %v655_v0 = vld [vmem:[%s874_s5 + $0x18] sm:$0xff] }
  0x11   :  { %518 = vmatmul.msk.bf16.vlgmr.msra.gmra.mxu1 %vm77_vm0, %v52_v18  ;;  %383 = vmatpush.bf16.msrb.mxu0 %v659_v32  ;;  %v654_v1 = vld [vmem:[%s874_s5 + $0x10] sm:$0xff]  ;;  %v653_v2 = vld [vmem:[%s874_s5 + $0x8] sm:$0xff]  ;;  %v652_v3 = vld [vmem:[%s874_s5] sm:$0xff] }
  0x12   :  { %v302_v4 = vld [vmem:[%s873_s4] sm:$0x1] }
  0x13   :  { %274 = vmatpush.bf16.msra.mxu2 %v641_v19  ;;  %v304_v8 = vpack.i.b16 %v302_v4, %v302_v4 }
  0x14   :  { %288 = vmatpush.bf16.msra.mxu3 %v649_v20  ;;  %v114_v35 = vld [vmem:[#allocation1] sm:$0xff]  ;;  %v115_v36 = vld [vmem:[#allocation1 + $0x9] sm:$0xff] }
  0x15   :  { %384 = vmatpush.bf16.msrb.mxu0 %v658_v33  ;;  %v116_v38 = vpack.i.b16 %v114_v35, %v114_v35  ;;  %v119_v39 = vpack.i.b16 %v115_v36, %v115_v36  ;;  %v306_v10 = vperm.slane %v304_v8, 0 }
  0x17   :  { %275 = vmatpush.bf16.msra.mxu2 %v640_v22  ;;  %v118_v42 = vperm.slane %v116_v38, 0  ;;  %v121_v43 = vperm.slane %v119_v39, 0  ;;  %v309_v14 = vunpack.c.l.bf16 %v306_v10 }
  0x18   :  { %289 = vmatpush.bf16.msra.mxu3 %v648_v23  ;;  %v663_v23 = vld [vmem:[%s876_s7 + $0x18] sm:$0xff] }
  0x19   :  { %385 = vmatpush.bf16.msrb.mxu0 %v657_v34  ;;  %v126_v47 = vunpack.c.l.bf16 %v118_v42  ;;  %v127_v48 = vunpack.c.l.bf16 %v121_v43  ;;  %456 = vmatpush.bf16.msrb.mxu1 %v663_v23  ;;  %v468_v42 = vld [vmem:[%s877_s8] sm:$0x1] }
  0x1b   :  { %276 = vmatpush.bf16.msra.mxu2 %v639_v24  ;;  %v662_v24 = vld [vmem:[%s876_s7 + $0x10] sm:$0xff] }
  0x1c   :  { %290 = vmatpush.bf16.msra.mxu3 %v647_v25  ;;  %v661_v25 = vld [vmem:[%s876_s7 + $0x8] sm:$0xff] }
  0x1d   :  { %386 = vmatpush.bf16.msrb.mxu0 %v656_v63  ;;  %457 = vmatpush.bf16.msrb.mxu1 %v662_v24 }
  0x1f   :  { %277 = vmatpush.bf16.msra.mxu2 %v638_v26  ;;  %v660_v26 = vld [vmem:[%s876_s7] sm:$0xff] }
  0x20   :  { %291 = vmatpush.bf16.msra.mxu3 %v646_v27  ;;  %v399_v27 = vld [vmem:[%s875_s6] sm:$0x1]  ;;  %s728_s6 = smov [#allocation5]  }
  0x21   :  { %387 = vmatpush.bf16.msrb.mxu0 %v655_v0  ;;  %458 = vmatpush.bf16.msrb.mxu1 %v661_v25  ;;  %s486_s19 = sshll.u32 %s728_s6, 4  ;;  %s487_s19 = int_to_ptr.vmem [resolvable:$true] %s486_s19 }
  0x23   :  { %278 = vmatpush.bf16.msra.mxu2 %v637_v28  ;;  %v401_v28 = vpack.i.b16 %v399_v27, %v399_v27 }
  0x24   :  { %292 = vmatpush.bf16.msra.mxu3 %v645_v29 }
  0x25   :  { %388 = vmatpush.bf16.msrb.mxu0 %v654_v1  ;;  %459 = vmatpush.bf16.msrb.mxu1 %v660_v26 }
  0x27   :  { %279 = vmatpush.bf16.msra.mxu2 %v636_v30 }
  0x28   :  { %293 = vmatpush.bf16.msra.mxu3 %v644_v31  ;;  %v403_v31 = vperm.slane %v401_v28, 0 }
  0x29   :  { %389 = vmatpush.bf16.msrb.mxu0 %v653_v2 }
  0x2a   :  { %v406_v33 = vunpack.c.l.bf16 %v403_v31 }
  0x2d   :  { %390 = vmatpush.bf16.msrb.mxu0 %v652_v3 }
  0x8d   :  { %v90_v37 = vpop.f32.mrf.mxu0 }
  0x8e   :  { %v104_v40 = vpop.f32.mrf.mxu1 }
  0x8f   :  { %v109_v41 = vpack.c.bf16 %v104_v40, %v90_v37 }
  0x91   :  { %v122_v44 = vunpack.c.l.bf16 %v109_v41  ;;  %v123_v45 = vunpack.c.h.bf16 %v109_v41 }
  0x93   :  { %v128_v53 = vadd.f32 %v126_v47, %v122_v44  ;;  %v129_v54 = vadd.f32 %v127_v48, %v123_v45  ;;  %v470_v44 = vpack.i.b16 %v468_v42, %v468_v42 }
  0x95   :  { %v92_v46 = vpop.f32.mrf.mxu0  ;;  %v138_v57 = vmax.f32 %v128_v53, 0.0  ;;  %v139_v59 = vmax.f32 %v129_v54, 0.0 }
  0x96   :  { %v106_v49 = vpop.f32.mrf.mxu1 }
  0x97   :  { %v110_v50 = vpack.c.bf16 %v106_v49, %v92_v46  ;;  %v472_v46 = vperm.slane %v470_v44, 0 }
  0x99   :  { %v124_v51 = vunpack.c.l.bf16 %v110_v50  ;;  %v125_v52 = vunpack.c.h.bf16 %v110_v50  ;;  %v475_v49 = vunpack.c.l.bf16 %v472_v46 }
  0x9b   :  { %v130_v55 = vadd.f32 %v126_v47, %v124_v51  ;;  %v131_v56 = vadd.f32 %v127_v48, %v125_v52 }
  0x9d   :  { %v140_v58 = vmax.f32 %v130_v55, 0.0  ;;  %v141_v60 = vmax.f32 %v131_v56, 0.0 }
  0x9f   :  { %v142_v61 = vpack.c.bf16 %v140_v58, %v138_v57  ;;  %v143_v62 = vpack.c.bf16 %v141_v60, %v139_v59 }
  0xa1   :  { %280 = vmatmul.bf16.vlgmr.msra.gmra.mxu2 %v142_v61  ;;  %294 = vmatmul.bf16.vlgmr.msra.gmra.mxu3 %v143_v62 }
 0x124   :  { %v281_v5 = vpop.f32.mrf.mxu2  ;;  %v295_v6 = vpop.f32.mrf.mxu3 }
 0x125   :  { %v296_v7 = vadd.f32 %v295_v6, %v281_v5 }
 0x127   :  { %v300_v9 = vpack.c.bf16 %v296_v7, %v296_v7 }
 0x129   :  { %v307_v13 = vunpack.c.l.bf16 %v300_v9 }
 0x12b   :  { %v310_v17 = vadd.f32 %v309_v14, %v307_v13 }
 0x12c   :  { %v283_v11 = vpop.f32.mrf.mxu2  ;;  %v297_v12 = vpop.f32.mrf.mxu3 }
 0x12d   :  { %v298_v15 = vadd.f32 %v297_v12, %v283_v11  ;;  %v316_v20 = vmax.f32 %v310_v17, 0.0 }
 0x12f   :  { %v301_v16 = vpack.c.bf16 %v298_v15, %v298_v15 }
 0x131   :  { %v308_v18 = vunpack.c.l.bf16 %v301_v16 }
 0x133   :  { %v311_v19 = vadd.f32 %v309_v14, %v308_v18 }
 0x135   :  { %v317_v21 = vmax.f32 %v311_v19, 0.0 }
 0x137   :  { %v318_v22 = vpack.c.bf16 %v317_v21, %v316_v20 }
 0x139   :  { %391 = vmatmul.bf16.vlgmr.msrb.gmra.mxu0 %v318_v22 }
 0x1b6   :  { %v392_v29 = vpop.f32.mrf.mxu0 }
 0x1b7   :  { %v397_v30 = vpack.c.bf16 %v392_v29, %v392_v29 }
 0x1b9   :  { %v404_v32 = vunpack.c.l.bf16 %v397_v30 }
 0x1bb   :  { %v407_v36 = vadd.f32 %v406_v33, %v404_v32 }
 0x1bd   :  { %v413_v39 = vmax.f32 %v407_v36, 0.0 }
 0x1be   :  { %v394_v34 = vpop.f32.mrf.mxu0 }
 0x1bf   :  { %v398_v35 = vpack.c.bf16 %v394_v34, %v394_v34 }
 0x1c1   :  { %v405_v37 = vunpack.c.l.bf16 %v398_v35 }
 0x1c3   :  { %v408_v38 = vadd.f32 %v406_v33, %v405_v37 }
 0x1c5   :  { %v414_v40 = vmax.f32 %v408_v38, 0.0 }
 0x1c7   :  { %v415_v41 = vpack.c.bf16 %v414_v40, %v413_v39 }
 0x1c9   :  { %631 = vmatmul.msk.bf16.vlgmr.msrb.gmra.mxu1 %vm448_vm1, %v415_v41 }
 0x246   :  { %v461_v43 = vpop.f32.mrf.mxu1 }
 0x247   :  { %v466_v45 = vpack.c.bf16 %v461_v43, %v461_v43 }
 0x249   :  { %v473_v48 = vunpack.c.l.bf16 %v466_v45 }
 0x24b   :  { %v476_v52 = vadd.f32 %v475_v49, %v473_v48 }
 0x24e   :  { %v463_v47 = vpop.f32.mrf.mxu1 }
 0x24f   :  { %v467_v50 = vpack.c.bf16 %v463_v47, %v463_v47 }
 0x251   :  { %v474_v51 = vunpack.c.l.bf16 %v467_v50 }
 0x253   :  { %v477_v53 = vadd.f32 %v475_v49, %v474_v51 }
 0x255   :  { %v667_v54 = vpack.c.bf16 %v477_v53, %v476_v52 }
 0x257   :  { %668 = vst [vmem:[#allocation5] sm:$0xff] %v667_v54  }
 0x258   :  { %494 = dma.vmem_to_hbm [thread:$0]  %s487_s19, 128, %s489_s21, [#allocation4], %s726_s14, %s726_s14, %s727_s15  }
 0x259   :  { %723 = dma.done.wait [#allocation4], 128  }
 0x25a   :  { %724 = vsyncadd [#allocation4], 4294967168 }
 0x25b   :  { %499 = vsyncpa [#allocation3], 1 }
 0x25c   :  { %500 = vsyncpa [#allocation4], 1 }

</bundles_post_ra>
